<compile_context>
chip_gen: v6e
topology: v6e:2x2x1
jax: 0.10.0
libtpu: 0.0.40
codegen_flags: <defaults>
</compile_context>

<pallas_src>
import functools

import jax
import jax.numpy as jnp
from jax.experimental import pallas as pl
from jax.experimental.pallas import tpu as pltpu

BN_EPS = 1e-5
F_PAD = 128                      # every feature dim padded to one lane width
VMEM_LIMIT = 48 * 1024 * 1024    # explicit scoped-VMEM budget (safe v5e/v6e/v7x)


def _round_up(v, m):
    return ((v + m - 1) // m) * m


def _pad2(a, rows, cols, dtype):
    return jnp.pad(a.astype(dtype),
                   ((0, rows - a.shape[0]), (0, cols - a.shape[1])))


def _pick_row_tile(n_pad):
    """Largest row tile (512/256/128) dividing n_pad that keeps the
    double-buffered A row tiles + resident features well inside VMEM."""
    z_bytes = n_pad * F_PAD * 2            # resident bf16 node features
    for tm in (512, 256, 128):
        if n_pad % tm:
            continue
        a_bytes = 2 * tm * n_pad * 2       # double-buffered bf16 A row tiles
        if a_bytes + z_bytes + (2 << 20) <= 40 * 1024 * 1024:
            return tm
    return 128


# ------------------------------- kernels -----------------------------------
def _project_kernel(x_ref, w_ref, o_ref):
    """z_tile = x_tile @ W'  (bf16 x bf16 -> f32 accumulate, stored bf16)."""
    o_ref[...] = jnp.dot(
        x_ref[...], w_ref[...],
        preferred_element_type=jnp.float32).astype(o_ref.dtype)


def _agg_project_kernel(a_ref, z_ref, b_ref, wn_ref, o_ref):
    """One hidden GCN layer fused with the NEXT layer's weight projection:
       o_tile = relu(A_tile @ z + b') @ W_next'   (BN pre-folded)."""
    agg = jnp.dot(a_ref[...], z_ref[...],
                  preferred_element_type=jnp.float32)            # [TM, 128] f32
    h = jnp.maximum(agg + b_ref[...], 0.0).astype(wn_ref.dtype)   # bf16 for MXU
    o_ref[...] = jnp.dot(
        h, wn_ref[...],
        preferred_element_type=jnp.float32).astype(o_ref.dtype)  # lane-dense


def _agg_softmax_kernel(a_ref, z_ref, b_ref, o_ref, *, class_num):
    """Last GCN layer + log_softmax over the (padded) class dimension."""
    agg = jnp.dot(a_ref[...], z_ref[...],
                  preferred_element_type=jnp.float32)
    logits = agg + b_ref[...]
    # Mask padded class lanes out of the softmax statistics.
    lane = jax.lax.broadcasted_iota(jnp.int32, logits.shape, 1)
    mask = lane < class_num
    masked = jnp.where(mask, logits, jnp.float32(-1e30))
    m = jnp.max(masked, axis=1, keepdims=True)
    e = jnp.where(mask, jnp.exp(logits - m), 0.0)
    lse = jnp.log(jnp.sum(e, axis=1, keepdims=True))
    o_ref[...] = (logits - m - lse).astype(o_ref.dtype)


# ----------------------------- pallas_call glue ------------------------------
def _project_call(x_p, w_p, tm):
    n_pad, f_in = x_p.shape
    f_out = w_p.shape[1]
    return pl.pallas_call(
        _project_kernel,
        out_shape=jax.ShapeDtypeStruct((n_pad, f_out), jnp.bfloat16),
        grid_spec=pltpu.PrefetchScalarGridSpec(
            num_scalar_prefetch=0,
            grid=(n_pad // tm,),
            in_specs=[
                pl.BlockSpec((tm, f_in), lambda i: (i, 0)),
                pl.BlockSpec((f_in, f_out), lambda i: (0, 0)),
            ],
            out_specs=pl.BlockSpec((tm, f_out), lambda i: (i, 0)),
        ),
        compiler_params=pltpu.CompilerParams(
            dimension_semantics=("parallel",),
            vmem_limit_bytes=VMEM_LIMIT),
    )(x_p, w_p)


def _agg_call(kernel, a_p, z_p, b_p, w_next, out_dtype, tm):
    """Row-tiled aggregation call: A_hat streamed in (tm, N_pad) bf16 tiles,
    small operands (z, b, W_next) resident in VMEM across the grid."""
    n_pad = a_p.shape[0]
    in_specs = [
        pl.BlockSpec((tm, n_pad), lambda i: (i, 0)),          # A row tiles
        pl.BlockSpec(z_p.shape, lambda i: (0, 0)),            # full features
        pl.BlockSpec(b_p.shape, lambda i: (0, 0)),            # folded bias
    ]
    args = [a_p, z_p, b_p]
    if w_next is not None:
        in_specs.append(pl.BlockSpec(w_next.shape, lambda i: (0, 0)))
        args.append(w_next)
    return pl.pallas_call(
        kernel,
        out_shape=jax.ShapeDtypeStruct((n_pad, F_PAD), out_dtype),
        grid_spec=pltpu.PrefetchScalarGridSpec(
            num_scalar_prefetch=0,
            grid=(n_pad // tm,),
            in_specs=in_specs,
            out_specs=pl.BlockSpec((tm, F_PAD), lambda i: (i, 0)),
        ),
        compiler_params=pltpu.CompilerParams(
            dimension_semantics=("parallel",),
            vmem_limit_bytes=VMEM_LIMIT),
    )(*args)


# ------------------------------- wrapper ------------------------------------
def gcn_forward(a_hat, x, params):
    """Fused-per-layer GCN forward pass (inference mode)."""
    N, feat_num = x.shape
    class_num = params["w3"].shape[1]

    # ---- fold eval-mode BatchNorm into the conv weights/biases (exact) ----
    s1 = params["g1"] * jax.lax.rsqrt(params["v1"] + BN_EPS)
    w1 = params["w1"] * s1
    b1 = (params["b1"] - params["m1"]) * s1 + params["be1"]
    s2 = params["g2"] * jax.lax.rsqrt(params["v2"] + BN_EPS)
    w2 = params["w2"] * s2
    b2 = (params["b2"] - params["m2"]) * s2 + params["be2"]
    w3, b3 = params["w3"], params["b3"]

    # ---- pad to TPU-friendly, lane-dense shapes ----
    n_pad = _round_up(max(N, 128), 128)
    f_in_pad = _round_up(feat_num, F_PAD)
    tm = _pick_row_tile(n_pad)

    # bf16 for all MXU operands; f32 only for the bias adds (VPU).
    a_p = _pad2(a_hat, n_pad, n_pad, jnp.bfloat16)
    x_p = _pad2(x, n_pad, f_in_pad, jnp.bfloat16)

    w1_p = _pad2(w1, f_in_pad, F_PAD, jnp.bfloat16)
    w2_p = _pad2(w2, F_PAD, F_PAD, jnp.bfloat16)
    w3_p = _pad2(w3, F_PAD, F_PAD, jnp.bfloat16)
    b1_p = _pad2(b1, 1, F_PAD, jnp.float32)
    b2_p = _pad2(b2, 1, F_PAD, jnp.float32)
    b3_p = _pad2(b3, 1, F_PAD, jnp.float32)

    # z1 = x @ W1'                      (transform first: one small kernel)
    z1 = _project_call(x_p, w1_p, tm)
    # z2 = relu(A @ z1 + b1') @ W2'     (aggregation + next-layer projection)
    z2 = _agg_call(_agg_project_kernel, a_p, z1, b1_p, w2_p, jnp.bfloat16, tm)
    # z3 = relu(A @ z2 + b2') @ W3
    z3 = _agg_call(_agg_project_kernel, a_p, z2, b2_p, w3_p, jnp.bfloat16, tm)
    # out = log_softmax(A @ z3 + b3)
    out = _agg_call(
        functools.partial(_agg_softmax_kernel, class_num=class_num),
        a_p, z3, b3_p, None, jnp.float32, tm)

    return out[:N, :class_num]


# ------------------------------ glue (plain JAX) ----------------------------
def build_normalized_adjacency(edge_index, num_nodes):
    """A_hat = D^-1/2 (A + I) D^-1/2 as a dense float32 matrix."""
    src, dst = edge_index
    a = jnp.zeros((num_nodes, num_nodes), jnp.float32)
    a = a.at[src, dst].set(1.0)
    a = a.at[dst, src].set(1.0)                       # undirected
    a = a + jnp.eye(num_nodes, dtype=jnp.float32)     # self loops
    deg = jnp.sum(a, axis=1)
    d_inv_sqrt = jax.lax.rsqrt(deg)
    return a * d_inv_sqrt[:, None] * d_inv_sqrt[None, :]


def init_params(key, feat_num, class_num):
    """Deterministic synthetic parameter init (shapes from GCN.__init__)."""
    h1, h2 = 8, 16
    ks = jax.random.split(key, 10)

    def lin(k, fan_in, fan_out):
        scale = 1.0 / jnp.sqrt(float(fan_in))
        return jax.random.uniform(k, (fan_in, fan_out), jnp.float32,
                                  -scale, scale)

    return {
        "w1": lin(ks[0], feat_num, h1),
        "b1": jnp.zeros((1, h1), jnp.float32),
        "g1": jnp.ones((1, h1), jnp.float32),
        "be1": jnp.zeros((1, h1), jnp.float32),
        "m1": 0.1 * jax.random.normal(ks[1], (1, h1), jnp.float32),
        "v1": 1.0 + 0.1 * jax.random.uniform(ks[2], (1, h1), jnp.float32),

        "w2": lin(ks[3], h1, h2),
        "b2": jnp.zeros((1, h2), jnp.float32),
        "g2": jnp.ones((1, h2), jnp.float32),
        "be2": jnp.zeros((1, h2), jnp.float32),
        "m2": 0.1 * jax.random.normal(ks[4], (1, h2), jnp.float32),
        "v2": 1.0 + 0.1 * jax.random.uniform(ks[5], (1, h2), jnp.float32),

        "w3": lin(ks[6], h2, class_num),
        "b3": jnp.zeros((1, class_num), jnp.float32),
    }


def _reference_forward(a_hat, x, params):
    """Pure-JAX f32 reference matching the PyTorch module in eval mode."""
    def bn(h, g, be, m, v):
        return (h - m) * g * jax.lax.rsqrt(v + BN_EPS) + be
    h = a_hat @ (x @ params["w1"]) + params["b1"]
    h = jnp.maximum(bn(h, params["g1"], params["be1"],
                       params["m1"], params["v1"]), 0.0)
    h = a_hat @ (h @ params["w2"]) + params["b2"]
    h = jnp.maximum(bn(h, params["g2"], params["be2"],
                       params["m2"], params["v2"]), 0.0)
    h = a_hat @ (h @ params["w3"]) + params["b3"]
    return jax.nn.log_softmax(h, axis=1)


if __name__ == "__main__":
    key = jax.random.PRNGKey(0)
    k_x, k_p = jax.random.split(key)

    # Small synthetic graph: N nodes, feat_num features, class_num classes.
    N, feat_num, class_num = 64, 16, 4

    # Standardized node features (mimics StandardScaler output statistics).
    x = jax.random.normal(k_x, (N, feat_num), jnp.float32)

    # Deterministic edge_index: ring graph plus a few chords.
    src = jnp.arange(N, dtype=jnp.int32)
    ring_dst = (src + 1) % N
    chord_dst = (src + 7) % N
    edge_index = (jnp.concatenate([src, src]),
                  jnp.concatenate([ring_dst, chord_dst]))

    a_hat = build_normalized_adjacency(edge_index, N)
    params = init_params(k_p, feat_num, class_num)

    out = gcn_forward(a_hat, x, params)
    out = jax.block_until_ready(out)

    assert out.shape == (N, class_num)
    # log_softmax rows must exponentiate-sum to 1.
    row_sums = jnp.sum(jnp.exp(out), axis=1)
    assert jnp.allclose(row_sums, 1.0, atol=1e-3), row_sums
    # Match the pure-JAX f32 reference (bf16 MXU operands -> loose tolerance).
    ref = _reference_forward(a_hat, x, params)
    max_err = jnp.max(jnp.abs(out - ref))
    assert max_err < 1e-1, max_err

    print("KERNEL_OK")
</pallas_src>

<mosaic_0001>
module attributes {stable_mosaic.version = 11 : i64} {
  func.func @_project_kernel(%arg0: i32, %arg1: memref<128x128xbf16, #tpu.memory_space<vmem>>, %arg2: memref<128x128xbf16, #tpu.memory_space<vmem>>, %arg3: memref<128x128xbf16, #tpu.memory_space<vmem>>) attributes {dimension_semantics = [#tpu.dimension_semantics<parallel>], iteration_bounds = array<i64: 1>, scalar_prefetch = 0 : i64, scratch_operands = 0 : i64, tpu.core_type = #tpu.core_type<tc>, window_params = [{transform_indices = @transform_0, window_bounds = array<i64: 128, 128>}, {pipeline_mode = #tpu.pipeline_mode<synchronous>, transform_indices = @transform_1, window_bounds = array<i64: 128, 128>}, {transform_indices = @transform_2, window_bounds = array<i64: 128, 128>}]} {
    %c0 = arith.constant 0 : index
    %c0_0 = arith.constant 0 : index
    %0 = vector.load %arg1[%c0, %c0_0] : memref<128x128xbf16, #tpu.memory_space<vmem>>, vector<128x128xbf16>
    %c0_1 = arith.constant 0 : index
    %c0_2 = arith.constant 0 : index
    %1 = vector.load %arg2[%c0_1, %c0_2] : memref<128x128xbf16, #tpu.memory_space<vmem>>, vector<128x128xbf16>
    %cst = arith.constant dense<0.000000e+00> : vector<128x128xf32>
    %2 = tpu.matmul %0, %1, %cst {dimension_numbers = #tpu.dot_dimension_numbers<[1], [0], [0], [1], [0, 0, 1, 1], [], []>} : vector<128x128xbf16>, vector<128x128xbf16>, vector<128x128xf32> -> vector<128x128xf32>
    %3 = arith.truncf %2 : vector<128x128xf32> to vector<128x128xbf16>
    %c0_3 = arith.constant 0 : index
    %c0_4 = arith.constant 0 : index
    %4 = vector.load %arg3[%c0_3, %c0_4] : memref<128x128xbf16, #tpu.memory_space<vmem>>, vector<128x128xbf16>
    tpu.vector_store %arg3[%c0_3, %c0_4], %3 {strides = array<i32>} : memref<128x128xbf16, #tpu.memory_space<vmem>>, vector<128x128xbf16>,
    return
  }
  func.func @transform_0(%arg0: i32) -> (i32, i32) {
    %c0_i32 = arith.constant 0 : i32
    %c0_i32_0 = arith.constant 0 : i32
    return %arg0, %c0_i32 : i32, i32
  }
  func.func @transform_1(%arg0: i32) -> (i32, i32) {
    %c0_i32 = arith.constant 0 : i32
    %c0_i32_0 = arith.constant 0 : i32
    %c0_i32_1 = arith.constant 0 : i32
    return %c0_i32, %c0_i32_0 : i32, i32
  }
  func.func @transform_2(%arg0: i32) -> (i32, i32) {
    %c0_i32 = arith.constant 0 : i32
    %c0_i32_0 = arith.constant 0 : i32
    return %arg0, %c0_i32 : i32, i32
  }
}

</mosaic_0001>

<bundles_post_ra>
// kernel: tpu_custom_call.1
= control target key start
LH: loop header
LB: loop body
LE: loop exit
PB: predicated region body
PF: predicated region fallthrough
CT: control target
= control target key end

     0   :  { %7 = vsyncpa [#allocation3], 0  ;;  %s648_s0 = inlined_call_operand.hbm [shape: bf16[128,128], index: 0, kind: input, shape index: {}]   ;;  %s649_s1 = inlined_call_operand.hbm [shape: bf16[128,128], index: 1, kind: input, shape index: {}]   ;;  %s650_s2 = inlined_call_operand.hbm [shape: bf16[128,128], index: 2, kind: output, shape index: {}]  }
   0x1   :  { %8 = vsyncpa [#allocation6], 0 }
   0x2   :  { %9 = vsyncpa [#allocation4], 0  ;;  %s610_s9 = smov [#allocation2]  }
   0x3   :  { %s15_s10 = sshll.u32 %s610_s9, 4  ;;  %s16_s10 = int_to_ptr.vmem [resolvable:$true] %s15_s10 }
   0x4   :  { %s552_s11 = scalar_lea.vmem %s16_s10, 1024  ;;  %p557_p1 = scmp.lt.s32.totalorder %s16_s10, %s16_s10 }
   0x5   :  { %p553_p0 = scmp.ne.s32.totalorder %s16_s10, %s552_s11  ;;  %p558_p2 = scmp.lt.s32.totalorder %s552_s11, %s552_s11 }
   0x7   :  { %p559_p3 = por %p558_p2, %p557_p1 }
   0x9   :  { %p560_p4 = pnand %p559_p3, %p553_p0 }
   0xb   :  { %563 = shalt.err (!%p560_p4)
}
   0xc   :  { %s611_s12 = smov 64   ;;  %s612_s13 = smov 4  }
   0xd   :  { %21 = dma.hbm_to_vmem [thread:$0]  %s648_s0, 1024, %s16_s10, [#allocation3], %s611_s12, %s611_s12, %s612_s13  }
   0xe   :  { %s613_s16 = smov [#allocation5]  }
   0xf   :  { %s27_s17 = sshll.u32 %s613_s16, 4  ;;  %s28_s17 = int_to_ptr.vmem [resolvable:$true] %s27_s17 }
  0x10   :  { %s572_s18 = scalar_lea.vmem %s28_s17, 1024  ;;  %p577_p6 = scmp.lt.s32.totalorder %s28_s17, %s28_s17 }
  0x11   :  { %p573_p5 = scmp.ne.s32.totalorder %s28_s17, %s572_s18  ;;  %p578_p7 = scmp.lt.s32.totalorder %s572_s18, %s572_s18 }
  0x13   :  { %p579_p8 = por %p578_p7, %p577_p6 }
  0x15   :  { %p580_p9 = pnand %p579_p8, %p573_p5 }
  0x17   :  { %583 = shalt.err (!%p580_p9)
}
  0x18   :  { %33 = dma.hbm_to_vmem [thread:$0]  %s649_s1, 1024, %s28_s17, [#allocation6], %s611_s12, %s611_s12, %s612_s13  }
  0x19   :  { %604 = dma.done.wait [#allocation3], 1024  }
  0x1a   :  { %605 = vsyncadd [#allocation3], 4294966272 }
  0x1b   :  { %606 = dma.done.wait [#allocation6], 1024  }
  0x1c   :  { %607 = vsyncadd [#allocation6], 4294966272  ;;  %v528_v0 = vld [vmem:[#allocation5 + $0x38] sm:$0xff]   ;;  %v529_v1 = vld [vmem:[#allocation5 + $0x30] sm:$0xff]   ;;  %s614_s0 = smov [#allocation7]  }
  0x1d   :  { %475 = vmatprep.subr.bf16.mxu0 %v528_v0  ;;  %507 = vmatprep.subr.bf16.mxu1 %v528_v0  ;;  %v530_v2 = vld [vmem:[#allocation5 + $0x28] sm:$0xff]   ;;  %v531_v3 = vld [vmem:[#allocation5 + $0x20] sm:$0xff]   ;;  %v532_v6 = vld [vmem:[#allocation5 + $0x18] sm:$0xff]   ;;  %s351_s1 = sshll.u32 %s614_s0, 4  ;;  %s352_s1 = int_to_ptr.vmem [resolvable:$true] %s351_s1 }
  0x1e   :  { %476 = vmatpush3.bf16.msra.mxu0 %v528_v0  ;;  %515 = vmatpush3.bf16.msra.mxu1 %v528_v0  ;;  %v536_v4 = vld [vmem:[#allocation2] sm:$0xff]   ;;  %v533_v7 = vld [vmem:[#allocation5 + $0x10] sm:$0xff]   ;;  %v534_v8 = vld [vmem:[#allocation5 + $0x8] sm:$0xff]   ;;  %s584_s21 = scalar_lea.vmem %s352_s1, 1024  ;;  %p589_p11 = scmp.lt.s32.totalorder %s352_s1, %s352_s1 }
  0x1f   :  { %477 = vmatprep.subr.bf16.mxu0 %v529_v1  ;;  %508 = vmatprep.subr.bf16.mxu1 %v529_v1  ;;  %v537_v5 = vld [vmem:[#allocation2 + $0x20] sm:$0xff]   ;;  %v538_v10 = vld [vmem:[#allocation2 + $0x8] sm:$0xff]   ;;  %v540_v12 = vld [vmem:[#allocation2 + $0x10] sm:$0xff]   ;;  %p585_p10 = scmp.ne.s32.totalorder %s352_s1, %s584_s21  ;;  %p590_p12 = scmp.lt.s32.totalorder %s584_s21, %s584_s21 }
  0x20   :  { %491 = vmatprep.mubr.bf16.mxu0 %v536_v4  ;;  %499 = vmatprep.mubr.bf16.mxu1 %v537_v5  ;;  %v535_v9 = vld [vmem:[#allocation5] sm:$0xff]   ;;  %v539_v11 = vld [vmem:[#allocation2 + $0x28] sm:$0xff]   ;;  %v541_v13 = vld [vmem:[#allocation2 + $0x30] sm:$0xff]  }
  0x21   :  { %v542_v14 = vld [vmem:[#allocation2 + $0x18] sm:$0xff]   ;;  %p591_p13 = por %p590_p12, %p589_p11 }
  0x22   :  { %478 = vmatpush3.bf16.msra.mxu0 %v529_v1  ;;  %516 = vmatpush3.bf16.msra.mxu1 %v529_v1  ;;  %v543_v15 = vld [vmem:[#allocation2 + $0x38] sm:$0xff]  }
  0x23   :  { %479 = vmatprep.subr.bf16.mxu0 %v530_v2  ;;  %509 = vmatprep.subr.bf16.mxu1 %v530_v2  ;;  %p592_p0 = pnand %p591_p13, %p585_p10 }
  0x26   :  { %480 = vmatpush3.bf16.msra.mxu0 %v530_v2  ;;  %517 = vmatpush3.bf16.msra.mxu1 %v530_v2 }
  0x27   :  { %481 = vmatprep.subr.bf16.mxu0 %v531_v3  ;;  %510 = vmatprep.subr.bf16.mxu1 %v531_v3 }
  0x2a   :  { %482 = vmatpush3.bf16.msra.mxu0 %v531_v3  ;;  %518 = vmatpush3.bf16.msra.mxu1 %v531_v3 }
  0x2b   :  { %483 = vmatprep.subr.bf16.mxu0 %v532_v6  ;;  %511 = vmatprep.subr.bf16.mxu1 %v532_v6 }
  0x2e   :  { %484 = vmatpush3.bf16.msra.mxu0 %v532_v6  ;;  %519 = vmatpush3.bf16.msra.mxu1 %v532_v6 }
  0x2f   :  { %485 = vmatprep.subr.bf16.mxu0 %v533_v7  ;;  %512 = vmatprep.subr.bf16.mxu1 %v533_v7 }
  0x32   :  { %486 = vmatpush3.bf16.msra.mxu0 %v533_v7  ;;  %520 = vmatpush3.bf16.msra.mxu1 %v533_v7 }
  0x33   :  { %487 = vmatprep.subr.bf16.mxu0 %v534_v8  ;;  %513 = vmatprep.subr.bf16.mxu1 %v534_v8 }
  0x36   :  { %488 = vmatpush3.bf16.msra.mxu0 %v534_v8  ;;  %521 = vmatpush3.bf16.msra.mxu1 %v534_v8 }
  0x37   :  { %489 = vmatprep.subr.bf16.mxu0 %v535_v9  ;;  %514 = vmatprep.subr.bf16.mxu1 %v535_v9 }
  0x3a   :  { %490 = vmatpush3.bf16.msra.mxu0 %v535_v9  ;;  %522 = vmatpush3.bf16.msra.mxu1 %v535_v9 }
  0x3d   :  { %492 = vmatmul.mubr.bf16.vlgmr.msra.gmra.mxu0 %v538_v10  ;;  %500 = vmatmul.mubr.bf16.vlgmr.msra.gmra.mxu1 %v539_v11 }
  0x3e   :  { %495 = vmatprep.mubr.bf16.mxu0 %v540_v12  ;;  %503 = vmatprep.mubr.bf16.mxu1 %v541_v13 }
  0x45   :  { %496 = vmatmul.mubr.bf16.gmra.mxu0 %v542_v14  ;;  %504 = vmatmul.mubr.bf16.gmra.mxu1 %v543_v15 }
  0xfd   :  { %v493_v16 = vpop.f32.mrf.mxu0  ;;  %v501_v17 = vpop.f32.mrf.mxu1 }
  0xff   :  { %v203_v18 = vpop.f32.mrf.mxu0  ;;  %v235_v19 = vpop.f32.mrf.mxu1 }
 0x101   :  { %v494_v20 = vpop.f32.mrf.mxu0  ;;  %v502_v21 = vpop.f32.mrf.mxu1 }
 0x102   :  { %v420_v22 = vpack.c.bf16 %v494_v20, %v493_v16  ;;  %v440_v23 = vpack.c.bf16 %v502_v21, %v501_v17 }
 0x103   :  { %v206_v24 = vpop.f32.mrf.mxu0  ;;  %v238_v25 = vpop.f32.mrf.mxu1 }
 0x104   :  { %452 = vst [vmem:[#allocation7 + $0x8] sm:$0xff] %v420_v22   ;;  %456 = vst [vmem:[#allocation7 + $0x28] sm:$0xff] %v440_v23   ;;  %v415_v26 = vpack.c.bf16 %v206_v24, %v203_v18  ;;  %v435_v27 = vpack.c.bf16 %v238_v25, %v235_v19 }
 0x105   :  { %v497_v28 = vpop.f32.mrf.mxu0  ;;  %v505_v29 = vpop.f32.mrf.mxu1 }
 0x106   :  { %416 = vst [vmem:[#allocation7] sm:$0xff] %v415_v26   ;;  %455 = vst [vmem:[#allocation7 + $0x20] sm:$0xff] %v435_v27  }
 0x107   :  { %v219_v30 = vpop.f32.mrf.mxu0  ;;  %v251_v31 = vpop.f32.mrf.mxu1 }
 0x109   :  { %v498_v32 = vpop.f32.mrf.mxu0  ;;  %v506_v33 = vpop.f32.mrf.mxu1 }
 0x10a   :  { %v430_v34 = vpack.c.bf16 %v498_v32, %v497_v28  ;;  %v450_v35 = vpack.c.bf16 %v506_v33, %v505_v29 }
 0x10b   :  { %v222_v36 = vpop.f32.mrf.mxu0  ;;  %v254_v37 = vpop.f32.mrf.mxu1 }
 0x10c   :  { %454 = vst [vmem:[#allocation7 + $0x18] sm:$0xff] %v430_v34   ;;  %458 = vst [vmem:[#allocation7 + $0x38] sm:$0xff] %v450_v35   ;;  %v425_v38 = vpack.c.bf16 %v222_v36, %v219_v30  ;;  %v445_v39 = vpack.c.bf16 %v254_v37, %v251_v31 }
 0x10e   :  { %453 = vst [vmem:[#allocation7 + $0x10] sm:$0xff] %v425_v38   ;;  %457 = vst [vmem:[#allocation7 + $0x30] sm:$0xff] %v445_v39  }
 0x10f   :  { %595 = shalt.err (!%p592_p0)
}
 0x110   :  { %357 = dma.vmem_to_hbm [thread:$0]  %s352_s1, 1024, %s650_s2, [#allocation4], %s611_s12, %s611_s12, %s612_s13  }
 0x111   :  { %608 = dma.done.wait [#allocation4], 1024  }
 0x112   :  { %609 = vsyncadd [#allocation4], 4294966272 }
 0x113   :  { %361 = vsyncpa [#allocation3], 1 }
 0x114   :  { %362 = vsyncpa [#allocation6], 1 }
 0x115   :  { %363 = vsyncpa [#allocation4], 1 }

</bundles_post_ra>
